<compile_context>
chip_gen: v6e
topology: v6e:2x2x1
jax: 0.10.0
libtpu: 0.0.40
codegen_flags: <defaults>
</compile_context>

<pallas_src>
import jax
import jax.numpy as jnp
from jax.experimental import pallas as pl
from jax.experimental.pallas import tpu as pltpu


def _round_up(n, m):
    return ((n + m - 1) // m) * m


def residual_block_kernel(x_ref, w1_ref, b1_ref, w2_ref, b2_ref, o_ref):
    x = x_ref[...]                                   # [TM, Dp]  f32 (residual path)
    xb = x.astype(jnp.bfloat16)                      # bf16 for the MXU

    # fc1 + bias + ReLU   (dropout = identity in eval mode)
    h = jnp.dot(xb, w1_ref[...], preferred_element_type=jnp.float32)   # [TM, Hp] f32
    h = jnp.maximum(h + b1_ref[...], 0.0)

    # fc2 + bias + ReLU   (dropout = identity in eval mode)
    y = jnp.dot(h.astype(jnp.bfloat16), w2_ref[...],
                preferred_element_type=jnp.float32)                    # [TM, Dp] f32
    y = jnp.maximum(y + b2_ref[...], 0.0)

    # residual add in f32
    o_ref[...] = (y + x).astype(o_ref.dtype)


def residual_block_widen(x, w1, b1, w2, b2, *, max_tile_m=256):
    """x: [B, D], w1: [D, H], b1: [H], w2: [H, D], b2: [D] -> [B, D]  (H = 4*D)."""
    B, D = x.shape
    H = w1.shape[1]
    assert w1.shape == (D, H) and w2.shape == (H, D)
    assert b1.shape == (H,) and b2.shape == (D,)

    # Lane-dense padding (multiples of 128 on the feature axes), sublane-aligned
    # batch tile. Zero padding is exact for this op (padded lanes stay 0 and are
    # sliced off at the end).
    Dp = _round_up(D, 128)
    Hp = _round_up(H, 128)
    TM = min(max_tile_m, _round_up(B, 8))
    Bp = _round_up(B, TM)

    f32 = jnp.float32
    bf16 = jnp.bfloat16
    xp = jnp.zeros((Bp, Dp), x.dtype).at[:B, :D].set(x)
    w1p = jnp.zeros((Dp, Hp), bf16).at[:D, :H].set(w1.astype(bf16))
    b1p = jnp.zeros((1, Hp), f32).at[0, :H].set(b1.astype(f32))
    w2p = jnp.zeros((Hp, Dp), bf16).at[:H, :D].set(w2.astype(bf16))
    b2p = jnp.zeros((1, Dp), f32).at[0, :D].set(b2.astype(f32))

    grid = (Bp // TM,)
    out = pl.pallas_call(
        residual_block_kernel,
        out_shape=jax.ShapeDtypeStruct((Bp, Dp), x.dtype),
        grid=grid,
        in_specs=[
            pl.BlockSpec((TM, Dp), lambda i: (i, 0)),   # x: batch-tiled
            pl.BlockSpec((Dp, Hp), lambda i: (0, 0)),   # w1: grid-invariant
            pl.BlockSpec((1, Hp), lambda i: (0, 0)),    # b1
            pl.BlockSpec((Hp, Dp), lambda i: (0, 0)),   # w2
            pl.BlockSpec((1, Dp), lambda i: (0, 0)),    # b2
        ],
        out_specs=pl.BlockSpec((TM, Dp), lambda i: (i, 0)),
        compiler_params=pltpu.CompilerParams(
            dimension_semantics=("parallel",),
            vmem_limit_bytes=64 * 1024 * 1024,
        ),
    )(xp, w1p, b1p, w2p, b2p)

    return out[:B, :D]


def init_params(key, input_dim, dtype=jnp.float32):
    """Deterministic init matching nn.Linear shapes (weights stored pre-transposed)."""
    H = 4 * input_dim
    k1, k2, k3, k4 = jax.random.split(key, 4)
    lim1 = 1.0 / (input_dim ** 0.5)
    lim2 = 1.0 / (H ** 0.5)
    w1 = jax.random.uniform(k1, (input_dim, H), dtype, -lim1, lim1)   # fc1.weight.T
    b1 = jax.random.uniform(k2, (H,), dtype, -lim1, lim1)
    w2 = jax.random.uniform(k3, (H, input_dim), dtype, -lim2, lim2)   # fc2.weight.T
    b2 = jax.random.uniform(k4, (input_dim,), dtype, -lim2, lim2)
    return w1, b1, w2, b2


def reference(x, w1, b1, w2, b2):
    """Pure-JAX reference using the same bf16-matmul / f32-epilogue recipe."""
    xb = x.astype(jnp.bfloat16)
    h = jnp.dot(xb, w1.astype(jnp.bfloat16), preferred_element_type=jnp.float32) + b1
    h = jnp.maximum(h, 0.0)
    y = jnp.dot(h.astype(jnp.bfloat16), w2.astype(jnp.bfloat16),
                preferred_element_type=jnp.float32) + b2
    y = jnp.maximum(y, 0.0)
    return y + x


if __name__ == "__main__":
    key = jax.random.PRNGKey(0)
    kx, kp, kx2, kp2 = jax.random.split(key, 4)

    # Small shapes consistent with the module: batch=8, input_dim=32 (hidden=128).
    batch, input_dim = 8, 32
    x = jax.random.normal(kx, (batch, input_dim), jnp.float32)
    w1, b1, w2, b2 = init_params(kp, input_dim)

    out = jax.block_until_ready(residual_block_widen(x, w1, b1, w2, b2))
    ref = reference(x, w1, b1, w2, b2)
    assert out.shape == (batch, input_dim)
    assert jnp.allclose(out, ref, atol=1e-3, rtol=1e-3), float(jnp.max(jnp.abs(out - ref)))

    # Second check exercising feature padding + a multi-tile batch grid.
    batch2, input_dim2 = 260, 96          # deliberately not multiples of 256 / 128
    x2 = jax.random.normal(kx2, (batch2, input_dim2), jnp.float32)
    w1b, b1b, w2b, b2b = init_params(kp2, input_dim2)
    out2 = jax.block_until_ready(residual_block_widen(x2, w1b, b1b, w2b, b2b))
    ref2 = reference(x2, w1b, b1b, w2b, b2b)
    assert out2.shape == (batch2, input_dim2)
    assert jnp.allclose(out2, ref2, atol=1e-3, rtol=1e-3), float(jnp.max(jnp.abs(out2 - ref2)))

    print("KERNEL_OK")
</pallas_src>

<mosaic_0001>
module attributes {stable_mosaic.version = 11 : i64} {
  func.func @residual_block_kernel(%arg0: i32, %arg1: memref<8x128xf32, #tpu.memory_space<vmem>>, %arg2: memref<128x128xbf16, #tpu.memory_space<vmem>>, %arg3: memref<1x128xf32, #tpu.memory_space<vmem>>, %arg4: memref<128x128xbf16, #tpu.memory_space<vmem>>, %arg5: memref<1x128xf32, #tpu.memory_space<vmem>>, %arg6: memref<8x128xf32, #tpu.memory_space<vmem>>) attributes {dimension_semantics = [#tpu.dimension_semantics<parallel>], iteration_bounds = array<i64: 1>, scalar_prefetch = 0 : i64, scratch_operands = 0 : i64, tpu.core_type = #tpu.core_type<tc>, window_params = [{transform_indices = @transform_0, window_bounds = array<i64: 8, 128>}, {pipeline_mode = #tpu.pipeline_mode<synchronous>, transform_indices = @transform_1, window_bounds = array<i64: 128, 128>}, {pipeline_mode = #tpu.pipeline_mode<synchronous>, transform_indices = @transform_2, window_bounds = array<i64: 1, 128>}, {pipeline_mode = #tpu.pipeline_mode<synchronous>, transform_indices = @transform_3, window_bounds = array<i64: 128, 128>}, {pipeline_mode = #tpu.pipeline_mode<synchronous>, transform_indices = @transform_4, window_bounds = array<i64: 1, 128>}, {transform_indices = @transform_5, window_bounds = array<i64: 8, 128>}]} {
    %c0 = arith.constant 0 : index
    %c0_0 = arith.constant 0 : index
    %0 = vector.load %arg1[%c0, %c0_0] : memref<8x128xf32, #tpu.memory_space<vmem>>, vector<8x128xf32>
    %1 = arith.truncf %0 : vector<8x128xf32> to vector<8x128xbf16>
    %c0_1 = arith.constant 0 : index
    %c0_2 = arith.constant 0 : index
    %2 = vector.load %arg2[%c0_1, %c0_2] : memref<128x128xbf16, #tpu.memory_space<vmem>>, vector<128x128xbf16>
    %cst = arith.constant dense<0.000000e+00> : vector<8x128xf32>
    %3 = tpu.matmul %1, %2, %cst {dimension_numbers = #tpu.dot_dimension_numbers<[1], [0], [0], [1], [0, 0, 1, 1], [], []>} : vector<8x128xbf16>, vector<128x128xbf16>, vector<8x128xf32> -> vector<8x128xf32>
    %c0_3 = arith.constant 0 : index
    %c0_4 = arith.constant 0 : index
    %4 = vector.load %arg3[%c0_3, %c0_4] : memref<1x128xf32, #tpu.memory_space<vmem>>, vector<1x128xf32>
    %5 = vector.broadcast %4 : vector<1x128xf32> to vector<8x128xf32>
    %6 = arith.addf %3, %5 : vector<8x128xf32>
    %cst_5 = arith.constant 0.000000e+00 : f32
    %7 = vector.broadcast %cst_5 : f32 to vector<8x128xf32>
    %8 = arith.maximumf %6, %7 : vector<8x128xf32>
    %9 = arith.truncf %8 : vector<8x128xf32> to vector<8x128xbf16>
    %c0_6 = arith.constant 0 : index
    %c0_7 = arith.constant 0 : index
    %10 = vector.load %arg4[%c0_6, %c0_7] : memref<128x128xbf16, #tpu.memory_space<vmem>>, vector<128x128xbf16>
    %cst_8 = arith.constant dense<0.000000e+00> : vector<8x128xf32>
    %11 = tpu.matmul %9, %10, %cst_8 {dimension_numbers = #tpu.dot_dimension_numbers<[1], [0], [0], [1], [0, 0, 1, 1], [], []>} : vector<8x128xbf16>, vector<128x128xbf16>, vector<8x128xf32> -> vector<8x128xf32>
    %c0_9 = arith.constant 0 : index
    %c0_10 = arith.constant 0 : index
    %12 = vector.load %arg5[%c0_9, %c0_10] : memref<1x128xf32, #tpu.memory_space<vmem>>, vector<1x128xf32>
    %13 = vector.broadcast %12 : vector<1x128xf32> to vector<8x128xf32>
    %14 = arith.addf %11, %13 : vector<8x128xf32>
    %cst_11 = arith.constant 0.000000e+00 : f32
    %15 = vector.broadcast %cst_11 : f32 to vector<8x128xf32>
    %16 = arith.maximumf %14, %15 : vector<8x128xf32>
    %17 = arith.addf %16, %0 : vector<8x128xf32>
    %c0_12 = arith.constant 0 : index
    %c0_13 = arith.constant 0 : index
    %18 = vector.load %arg6[%c0_12, %c0_13] : memref<8x128xf32, #tpu.memory_space<vmem>>, vector<8x128xf32>
    tpu.vector_store %arg6[%c0_12, %c0_13], %17 {strides = array<i32>} : memref<8x128xf32, #tpu.memory_space<vmem>>, vector<8x128xf32>,
    return
  }
  func.func @transform_0(%arg0: i32) -> (i32, i32) {
    %c0_i32 = arith.constant 0 : i32
    %c0_i32_0 = arith.constant 0 : i32
    return %arg0, %c0_i32 : i32, i32
  }
  func.func @transform_1(%arg0: i32) -> (i32, i32) {
    %c0_i32 = arith.constant 0 : i32
    %c0_i32_0 = arith.constant 0 : i32
    %c0_i32_1 = arith.constant 0 : i32
    return %c0_i32, %c0_i32_0 : i32, i32
  }
  func.func @transform_2(%arg0: i32) -> (i32, i32) {
    %c0_i32 = arith.constant 0 : i32
    %c0_i32_0 = arith.constant 0 : i32
    %c0_i32_1 = arith.constant 0 : i32
    return %c0_i32, %c0_i32_0 : i32, i32
  }
  func.func @transform_3(%arg0: i32) -> (i32, i32) {
    %c0_i32 = arith.constant 0 : i32
    %c0_i32_0 = arith.constant 0 : i32
    %c0_i32_1 = arith.constant 0 : i32
    return %c0_i32, %c0_i32_0 : i32, i32
  }
  func.func @transform_4(%arg0: i32) -> (i32, i32) {
    %c0_i32 = arith.constant 0 : i32
    %c0_i32_0 = arith.constant 0 : i32
    %c0_i32_1 = arith.constant 0 : i32
    return %c0_i32, %c0_i32_0 : i32, i32
  }
  func.func @transform_5(%arg0: i32) -> (i32, i32) {
    %c0_i32 = arith.constant 0 : i32
    %c0_i32_0 = arith.constant 0 : i32
    return %arg0, %c0_i32 : i32, i32
  }
}

</mosaic_0001>

<bundles_post_ra>
// kernel: tpu_custom_call.1
= control target key start
LH: loop header
LB: loop body
LE: loop exit
PB: predicated region body
PF: predicated region fallthrough
CT: control target
= control target key end

     0   :  { %10 = vsyncpa [#allocation3], 0  ;;  %s548_s0 = inlined_call_operand.hbm [shape: f32[8,128], index: 0, kind: input, shape index: {}]   ;;  %s549_s1 = inlined_call_operand.hbm [shape: bf16[128,128], index: 1, kind: input, shape index: {}]   ;;  %s550_s2 = inlined_call_operand.vmem [shape: f32[1,128], index: 2, kind: input, shape index: {}]   ;;  %s551_s3 = inlined_call_operand.hbm [shape: bf16[128,128], index: 3, kind: input, shape index: {}]   ;;  %s552_s4 = inlined_call_operand.vmem [shape: f32[1,128], index: 4, kind: input, shape index: {}]   ;;  %s553_s5 = inlined_call_operand.hbm [shape: f32[8,128], index: 5, kind: output, shape index: {}]  }
   0x1   :  { %11 = vsyncpa [#allocation6], 0 }
   0x2   :  { %12 = vsyncpa [#allocation4], 0  ;;  %s492_s18 = smov [#allocation5]  }
   0x3   :  { %s28_s19 = sshll.u32 %s492_s18, 4  ;;  %s29_s19 = int_to_ptr.vmem [resolvable:$true] %s28_s19 }
   0x4   :  { %s414_s20 = scalar_lea.vmem %s29_s19, 1024  ;;  %p419_p1 = scmp.lt.s32.totalorder %s29_s19, %s29_s19 }
   0x5   :  { %p415_p0 = scmp.ne.s32.totalorder %s29_s19, %s414_s20  ;;  %p420_p2 = scmp.lt.s32.totalorder %s414_s20, %s414_s20 }
   0x7   :  { %p421_p3 = por %p420_p2, %p419_p1 }
   0x9   :  { %p422_p4 = pnand %p421_p3, %p415_p0 }
   0xb   :  { %425 = shalt.err (!%p422_p4)
}
   0xc   :  { %s493_s21 = smov 64   ;;  %s494_s22 = smov 4  }
   0xd   :  { %34 = dma.hbm_to_vmem [thread:$0]  %s549_s1, 1024, %s29_s19, [#allocation6], %s493_s21, %s493_s21, %s494_s22  }
   0xe   :  { %s495_s25 = smov [#allocation2]   ;;  %s496_s27 = smov [#allocation7]  }
   0xf   :  { %s19_s26 = sshll.u32 %s495_s25, 4  ;;  %s42_s28 = sshll.u32 %s496_s27, 4  ;;  %s20_s26 = int_to_ptr.vmem [resolvable:$true] %s19_s26  ;;  %s43_s28 = int_to_ptr.vmem [resolvable:$true] %s42_s28 }
  0x10   :  { %s434_s29 = scalar_lea.vmem %s20_s26, 128  ;;  %p439_p6 = scmp.lt.s32.totalorder %s20_s26, %s20_s26 }
  0x11   :  { %p435_p5 = scmp.ne.s32.totalorder %s20_s26, %s434_s29  ;;  %p440_p7 = scmp.lt.s32.totalorder %s434_s29, %s434_s29 }
  0x13   :  { %p441_p8 = por %p440_p7, %p439_p6 }
  0x15   :  { %p442_p9 = pnand %p441_p8, %p435_p5 }
  0x17   :  { %445 = shalt.err (!%p442_p9)
}
  0x18   :  { %22 = dma.hbm_to_vmem [thread:$0]  %s548_s0, 128, %s20_s26, [#allocation3]  }
  0x19   :  { %s454_s7 = scalar_lea.vmem %s43_s28, 1024  ;;  %p459_p11 = scmp.lt.s32.totalorder %s43_s28, %s43_s28 }
  0x1a   :  { %p455_p10 = scmp.ne.s32.totalorder %s43_s28, %s454_s7  ;;  %p460_p12 = scmp.lt.s32.totalorder %s454_s7, %s454_s7 }
  0x1c   :  { %p461_p13 = por %p460_p12, %p459_p11 }
  0x1e   :  { %p462_p0 = pnand %p461_p13, %p455_p10 }
  0x20   :  { %465 = shalt.err (!%p462_p0)
}
  0x21   :  { %48 = dma.hbm_to_vmem [thread:$0]  %s551_s3, 1024, %s43_s28, [#allocation6], %s493_s21, %s493_s21, %s494_s22  }
  0x22   :  { %486 = dma.done.wait [#allocation3], 128  }
  0x23   :  { %487 = vsyncadd [#allocation3], 4294967168 }
  0x24   :  { %488 = dma.done.wait [#allocation6], 2048  }
  0x25   :  { %489 = vsyncadd [#allocation6], 4294965248  ;;  %v497_v0 = vmov 0.0   ;;  %vm498_vm0 = vmmov 0   ;;  %v390_v1 = vld [vmem:[#allocation5 + $0x38] sm:$0xff]   ;;  %v391_v2 = vld [vmem:[#allocation5 + $0x30] sm:$0xff]  }
  0x26   :  { %342 = vmatprep.subr.bf16.mxu0 %v497_v0  ;;  %358 = vmatprep.mubr.msk.bf16.mxu0 %vm498_vm0, %v497_v0  ;;  %v392_v3 = vld [vmem:[#allocation5 + $0x28] sm:$0xff]   ;;  %v398_v4 = vld [vmem:[#allocation7 + $0x38] sm:$0xff]   ;;  %v393_v5 = vld [vmem:[#allocation5 + $0x20] sm:$0xff]   ;;  %s499_s11 = smov [#allocation8]  }
  0x27   :  { %362 = vmatprep.subr.bf16.mxu1 %v497_v0  ;;  %378 = vmatprep.mubr.msk.bf16.mxu1 %vm498_vm0, %v497_v0  ;;  %v399_v6 = vld [vmem:[#allocation7 + $0x30] sm:$0xff]   ;;  %v394_v7 = vld [vmem:[#allocation5 + $0x18] sm:$0xff]   ;;  %v400_v8 = vld [vmem:[#allocation7 + $0x28] sm:$0xff]   ;;  %s296_s12 = sshll.u32 %s499_s11, 4  ;;  %s297_s12 = int_to_ptr.vmem [resolvable:$true] %s296_s12 }
  0x28   :  { %343 = vmatpush3.bf16.msra.mxu0 %v390_v1  ;;  %363 = vmatpush3.bf16.msra.mxu1 %v398_v4  ;;  %v395_v9 = vld [vmem:[#allocation5 + $0x10] sm:$0xff]   ;;  %v401_v10 = vld [vmem:[#allocation7 + $0x20] sm:$0xff]   ;;  %v396_v11 = vld [vmem:[#allocation5 + $0x8] sm:$0xff]   ;;  %p471_p2 = scmp.lt.s32.totalorder %s297_s12, %s297_s12 }
  0x29   :  { %344 = vmatprep.subr.bf16.mxu0 %v497_v0  ;;  %364 = vmatprep.subr.bf16.mxu1 %v497_v0  ;;  %v402_v12 = vld [vmem:[#allocation7 + $0x18] sm:$0xff]   ;;  %v397_v13 = vld [vmem:[#allocation5] sm:$0xff]   ;;  %v403_v15 = vld [vmem:[#allocation7 + $0x10] sm:$0xff]  }
  0x2a   :  { %v61_v14 = vld [vmem:[#allocation2] sm:$0xff]  ;;  %v404_v17 = vld [vmem:[#allocation7 + $0x8] sm:$0xff]   ;;  %v405_v18 = vld [vmem:[#allocation7] sm:$0xff]  }
  0x2b   :  { %v62_v16 = vpack.c.bf16 %v61_v14, %v61_v14  ;;  %v306_v19 = vld [vmem:[%s550_s2] ss:$0 sm:$0xff]  ;;  %s466_s2 = scalar_lea.vmem %s297_s12, 128 }
  0x2c   :  { %345 = vmatpush3.bf16.msra.mxu0 %v391_v2  ;;  %365 = vmatpush3.bf16.msra.mxu1 %v399_v6  ;;  %v315_v27 = vld [vmem:[%s552_s4] ss:$0 sm:$0xff]  ;;  %p467_p1 = scmp.ne.s32.totalorder %s297_s12, %s466_s2  ;;  %p472_p3 = scmp.lt.s32.totalorder %s466_s2, %s466_s2 }
  0x2d   :  { %346 = vmatprep.subr.bf16.mxu0 %v497_v0  ;;  %366 = vmatprep.subr.bf16.mxu1 %v497_v0 }
  0x2e   :  { %p473_p4 = por %p472_p3, %p471_p2 }
  0x30   :  { %347 = vmatpush3.bf16.msra.mxu0 %v392_v3  ;;  %367 = vmatpush3.bf16.msra.mxu1 %v400_v8  ;;  %p474_p5 = pnand %p473_p4, %p467_p1 }
  0x31   :  { %348 = vmatprep.subr.bf16.mxu0 %v497_v0  ;;  %368 = vmatprep.subr.bf16.mxu1 %v497_v0 }
  0x34   :  { %349 = vmatpush3.bf16.msra.mxu0 %v393_v5  ;;  %369 = vmatpush3.bf16.msra.mxu1 %v401_v10 }
  0x35   :  { %350 = vmatprep.subr.bf16.mxu0 %v497_v0  ;;  %370 = vmatprep.subr.bf16.mxu1 %v497_v0 }
  0x38   :  { %351 = vmatpush3.bf16.msra.mxu0 %v394_v7  ;;  %371 = vmatpush3.bf16.msra.mxu1 %v402_v12 }
  0x39   :  { %352 = vmatprep.subr.bf16.mxu0 %v497_v0  ;;  %372 = vmatprep.subr.bf16.mxu1 %v497_v0 }
  0x3c   :  { %353 = vmatpush3.bf16.msra.mxu0 %v395_v9  ;;  %373 = vmatpush3.bf16.msra.mxu1 %v403_v15 }
  0x3d   :  { %354 = vmatprep.subr.bf16.mxu0 %v497_v0  ;;  %374 = vmatprep.subr.bf16.mxu1 %v497_v0 }
  0x40   :  { %355 = vmatpush3.bf16.msra.mxu0 %v396_v11  ;;  %375 = vmatpush3.bf16.msra.mxu1 %v404_v17 }
  0x41   :  { %356 = vmatprep.subr.bf16.mxu0 %v497_v0  ;;  %376 = vmatprep.subr.bf16.mxu1 %v497_v0 }
  0x44   :  { %357 = vmatpush3.bf16.msra.mxu0 %v397_v13  ;;  %377 = vmatpush3.bf16.msra.mxu1 %v405_v18 }
  0x47   :  { %359 = vmatmul.mubr.bf16.vlgmr.msra.gmra.mxu0 %v62_v16 }
 0x107   :  { %v168_v20 = vpop.f32.mrf.mxu0 }
 0x108   :  { %v169_v21 = vadd.f32 %v306_v19, %v168_v20 }
 0x109   :  { %v360_v22 = vpop.f32.mrf.mxu0 }
 0x10a   :  { %v174_v23 = vmax.f32 %v169_v21, 0.0 }
 0x10b   :  { %v171_v24 = vpop.f32.mrf.mxu0 }
 0x10c   :  { %v175_v25 = vpack.c.bf16 %v174_v23, %v174_v23 }
 0x10d   :  { %v361_v26 = vpop.f32.mrf.mxu0 }
 0x10e   :  { %379 = vmatmul.mubr.bf16.vlgmr.msra.gmra.mxu1 %v175_v25 }
 0x1ce   :  { %v281_v28 = vpop.f32.mrf.mxu1 }
 0x1cf   :  { %v282_v29 = vadd.f32 %v315_v27, %v281_v28 }
 0x1d0   :  { %v380_v30 = vpop.f32.mrf.mxu1 }
 0x1d1   :  { %v287_v31 = vmax.f32 %v282_v29, 0.0 }
 0x1d2   :  { %v284_v32 = vpop.f32.mrf.mxu1 }
 0x1d3   :  { %v288_v33 = vadd.f32 %v287_v31, %v61_v14 }
 0x1d4   :  { %v381_v34 = vpop.f32.mrf.mxu1 }
 0x1d5   :  { %289 = vst [vmem:[#allocation8] sm:$0xff] %v288_v33 }
 0x1d6   :  { %477 = shalt.err (!%p474_p5)
}
 0x1d7   :  { %299 = dma.vmem_to_hbm [thread:$0]  %s297_s12, 128, %s553_s5, [#allocation4]  }
 0x1d8   :  { %490 = dma.done.wait [#allocation4], 128  }
 0x1d9   :  { %491 = vsyncadd [#allocation4], 4294967168 }
 0x1da   :  { %303 = vsyncpa [#allocation3], 1 }
 0x1db   :  { %304 = vsyncpa [#allocation6], 1 }
 0x1dc   :  { %305 = vsyncpa [#allocation4], 1 }

</bundles_post_ra>
